<compile_context>
chip_gen: v6e
topology: v6e:2x2x1
jax: 0.10.0
libtpu: 0.0.40
codegen_flags: <defaults>
</compile_context>

<pallas_src>
import jax
import jax.numpy as jnp
from jax.experimental import pallas as pl
from jax.experimental.pallas import tpu as pltpu


def _residual_linear_kernel(x_ref, w_ref, r_ref, b_ref, o_ref):
    """One (tm, tn) output tile: o = x_row_slab @ W_panel + b + x_residual.

    x_ref: (tm, D)  row slab (matmul LHS), resident across the N grid axis
    w_ref: (D, tn)  bf16 weight column panel
    r_ref: (tm, tn) residual tile of x (original dtype / full precision)
    b_ref: (1, tn)  bias slice (f32)
    o_ref: (tm, tn) output tile
    """
    y = jnp.dot(
        x_ref[...].astype(jnp.bfloat16),   # bf16 LHS -> full-rate MXU
        w_ref[...],                        # already bf16 (cast once in wrapper)
        preferred_element_type=jnp.float32,
    )
    y = y + b_ref[...].astype(jnp.float32)
    y = y + r_ref[...].astype(jnp.float32)  # residual added in f32
    o_ref[...] = y.astype(o_ref.dtype)


def residual_forward(x, w, b, *, tm=1024, tn=512):
    """x: (B, S, D), w: (D, D), b: (D,). Returns fn(x) + x with fn = Linear."""
    B, S, D = x.shape
    assert w.shape == (D, D) and b.shape == (D,)
    assert D % 128 == 0, "hidden dim must be lane-dense (multiple of 128)"

    M = B * S
    x2d = x.reshape(M, D)
    w_bf16 = w if w.dtype == jnp.bfloat16 else w.astype(jnp.bfloat16)
    b2d = b.reshape(1, D).astype(jnp.float32)

    x_bytes = jnp.dtype(x.dtype).itemsize
    out_bytes = x_bytes
    # Sublane multiple for the row tile: 8 (f32), 16 (bf16), 32 (int8/fp8).
    sub = max(8, 32 // x_bytes)

    # --- row tile (no divisibility requirement; ragged last tile is clipped) --
    if tm >= M:
        tm = M
    else:
        tm = max(sub, (tm // sub) * sub)

    # --- output-column tile: prefer multiples of 256 (v6e/v7x MXU width),
    # fall back to 128; must divide D so W panels tile exactly. ---------------
    step = 256 if (D % 256 == 0 and tn % 256 == 0) else 128
    tn = min(tn, D)
    tn = max(step, (tn // step) * step)
    while D % tn:
        tn -= step

    # --- per-generation VMEM cap + tile auto-shrink ---------------------------
    try:
        vmem_cap = int(pltpu.get_tpu_info().vmem_capacity_bytes * 0.8)
    except Exception:
        vmem_cap = 48 << 20  # conservative: safe on v7x (64 MiB physical / TC)

    def vmem_budget(tm_, tn_):
        return (
            2 * tm_ * D * x_bytes         # x row slab (double-buffered)
            + tm_ * D * 2                 # bf16 cast of the slab (internal temp)
            + 2 * D * tn_ * 2             # bf16 W panel
            + 2 * tm_ * tn_ * x_bytes     # residual tile
            + 2 * tm_ * tn_ * out_bytes   # output tile
            + 2 * tn_ * 4                 # bias
        )

    def next_tn(t):
        t -= step
        while t >= step and D % t:
            t -= step
        return t if t >= step else None

    while vmem_budget(tm, tn) > vmem_cap:
        if tm > max(sub, 64):
            tm = max(sub, ((tm // 2) // sub) * sub)
        else:
            nt = next_tn(tn)
            if nt is not None:
                tn = nt
            elif tm > sub:
                tm = max(sub, ((tm // 2) // sub) * sub)
            else:
                break

    n_row = pl.cdiv(M, tm)
    n_col = D // tn
    grid = (n_row, n_col)

    cost = pl.CostEstimate(
        flops=2 * M * D * D,
        transcendentals=0,
        bytes_accessed=(
            n_row * tm * D * x_bytes      # x matmul slab, once per row tile
            + M * D * x_bytes             # x residual tiles, once total
            + n_row * D * D * 2           # bf16 W, re-streamed once per row tile
            + M * D * out_bytes           # output write
            + n_col * D * 4               # bias
        ),
    )

    vmem_limit = min(vmem_cap, max(vmem_budget(tm, tn) + (4 << 20), 16 << 20))

    out2d = pl.pallas_call(
        _residual_linear_kernel,
        out_shape=jax.ShapeDtypeStruct((M, D), x.dtype),
        grid_spec=pltpu.PrefetchScalarGridSpec(
            num_scalar_prefetch=0,
            grid=grid,
            in_specs=[
                # Matmul LHS: full-K row slab, constant across the N axis so it
                # is fetched from HBM exactly once per row tile.
                pl.BlockSpec((tm, D), lambda i, j: (i, 0)),
                # bf16 weight column panel for this N tile.
                pl.BlockSpec((D, tn), lambda i, j: (0, j)),
                # Residual tile of x (original precision), each read once.
                pl.BlockSpec((tm, tn), lambda i, j: (i, j)),
                # Bias slice for this N tile.
                pl.BlockSpec((1, tn), lambda i, j: (0, j)),
            ],
            out_specs=pl.BlockSpec((tm, tn), lambda i, j: (i, j)),
        ),
        compiler_params=pltpu.CompilerParams(
            dimension_semantics=("parallel", "parallel"),
            vmem_limit_bytes=vmem_limit,
        ),
        cost_estimate=cost,
    )(x2d, w_bf16, x2d, b2d)

    return out2d.reshape(B, S, D)


if __name__ == "__main__":
    key = jax.random.PRNGKey(0)
    kx, kw, kb = jax.random.split(key, 3)

    B, S, D = 2, 8, 256  # D lane-dense (multiple of 128)
    x = jax.random.normal(kx, (B, S, D), dtype=jnp.float32)
    # Deterministic "fn" parameters (Linear D -> D).
    w = jax.random.normal(kw, (D, D), dtype=jnp.float32) * 0.05
    b = jax.random.normal(kb, (D,), dtype=jnp.float32) * 0.1

    # Small tiles purely to exercise both grid axes (2 row tiles x 2 N tiles)
    # at the demo shape; production shapes should use the defaults.
    out = residual_forward(x, w, b, tm=8, tn=128)
    jax.block_until_ready(out)

    # Reference: fn(x) + x with the same bf16 matmul operands / f32 accumulation.
    ref = (
        jnp.einsum(
            "bsd,de->bse",
            x.astype(jnp.bfloat16),
            w.astype(jnp.bfloat16),
            preferred_element_type=jnp.float32,
        )
        + b
        + x
    )
    assert out.shape == (B, S, D)
    assert jnp.allclose(out, ref, atol=2e-2, rtol=2e-2), float(
        jnp.max(jnp.abs(out - ref))
    )

    print("KERNEL_OK")
</pallas_src>

<mosaic_0001>
module attributes {stable_mosaic.version = 11 : i64} {
  func.func @_residual_linear_kernel(%arg0: i32, %arg1: i32, %arg2: memref<8x256xf32, #tpu.memory_space<vmem>>, %arg3: memref<256x128xbf16, #tpu.memory_space<vmem>>, %arg4: memref<8x128xf32, #tpu.memory_space<vmem>>, %arg5: memref<1x128xf32, #tpu.memory_space<vmem>>, %arg6: memref<8x128xf32, #tpu.memory_space<vmem>>) attributes {dimension_semantics = [#tpu.dimension_semantics<parallel>, #tpu.dimension_semantics<parallel>], iteration_bounds = array<i64: 2, 2>, scalar_prefetch = 0 : i64, scratch_operands = 0 : i64, tpu.core_type = #tpu.core_type<tc>, window_params = [{transform_indices = @transform_0, window_bounds = array<i64: 8, 256>}, {transform_indices = @transform_1, window_bounds = array<i64: 256, 128>}, {transform_indices = @transform_2, window_bounds = array<i64: 8, 128>}, {transform_indices = @transform_3, window_bounds = array<i64: 1, 128>}, {transform_indices = @transform_4, window_bounds = array<i64: 8, 128>}]} {
    %c0 = arith.constant 0 : index
    %c0_0 = arith.constant 0 : index
    %0 = vector.load %arg2[%c0, %c0_0] : memref<8x256xf32, #tpu.memory_space<vmem>>, vector<8x256xf32>
    %1 = arith.truncf %0 : vector<8x256xf32> to vector<8x256xbf16>
    %c0_1 = arith.constant 0 : index
    %c0_2 = arith.constant 0 : index
    %2 = vector.load %arg3[%c0_1, %c0_2] : memref<256x128xbf16, #tpu.memory_space<vmem>>, vector<256x128xbf16>
    %cst = arith.constant dense<0.000000e+00> : vector<8x128xf32>
    %3 = tpu.matmul %1, %2, %cst {dimension_numbers = #tpu.dot_dimension_numbers<[1], [0], [0], [1], [0, 0, 1, 1], [], []>} : vector<8x256xbf16>, vector<256x128xbf16>, vector<8x128xf32> -> vector<8x128xf32>
    %c0_3 = arith.constant 0 : index
    %c0_4 = arith.constant 0 : index
    %4 = vector.load %arg5[%c0_3, %c0_4] : memref<1x128xf32, #tpu.memory_space<vmem>>, vector<1x128xf32>
    %5 = vector.broadcast %4 : vector<1x128xf32> to vector<8x128xf32>
    %6 = arith.addf %3, %5 : vector<8x128xf32>
    %c0_5 = arith.constant 0 : index
    %c0_6 = arith.constant 0 : index
    %7 = vector.load %arg4[%c0_5, %c0_6] : memref<8x128xf32, #tpu.memory_space<vmem>>, vector<8x128xf32>
    %8 = arith.addf %6, %7 : vector<8x128xf32>
    %c0_7 = arith.constant 0 : index
    %c0_8 = arith.constant 0 : index
    %9 = vector.load %arg6[%c0_7, %c0_8] : memref<8x128xf32, #tpu.memory_space<vmem>>, vector<8x128xf32>
    tpu.vector_store %arg6[%c0_7, %c0_8], %8 {strides = array<i32>} : memref<8x128xf32, #tpu.memory_space<vmem>>, vector<8x128xf32>,
    return
  }
  func.func @transform_0(%arg0: i32, %arg1: i32) -> (i32, i32) {
    %c0_i32 = arith.constant 0 : i32
    %c0_i32_0 = arith.constant 0 : i32
    return %arg0, %c0_i32 : i32, i32
  }
  func.func @transform_1(%arg0: i32, %arg1: i32) -> (i32, i32) {
    %c0_i32 = arith.constant 0 : i32
    %c0_i32_0 = arith.constant 0 : i32
    return %c0_i32, %arg1 : i32, i32
  }
  func.func @transform_2(%arg0: i32, %arg1: i32) -> (i32, i32) {
    %c0_i32 = arith.constant 0 : i32
    return %arg0, %arg1 : i32, i32
  }
  func.func @transform_3(%arg0: i32, %arg1: i32) -> (i32, i32) {
    %c0_i32 = arith.constant 0 : i32
    %c0_i32_0 = arith.constant 0 : i32
    return %c0_i32, %arg1 : i32, i32
  }
  func.func @transform_4(%arg0: i32, %arg1: i32) -> (i32, i32) {
    %c0_i32 = arith.constant 0 : i32
    return %arg0, %arg1 : i32, i32
  }
}

</mosaic_0001>

<bundles_post_ra>
// kernel: tpu_custom_call.1
= control target key start
LH: loop header
LB: loop body
LE: loop exit
PB: predicated region body
PF: predicated region fallthrough
CT: control target
= control target key end

     0   :  { %s1498_s0 = inlined_call_operand.hbm [shape: f32[16,256], index: 0, kind: input, shape index: {}]   ;;  %s1499_s1 = inlined_call_operand.hbm [shape: bf16[256,256], index: 1, kind: input, shape index: {}]   ;;  %s1500_s2 = inlined_call_operand.hbm [shape: f32[16,256], index: 2, kind: input, shape index: {}]   ;;  %s1501_s3 = inlined_call_operand.vmem [shape: f32[1,256], index: 3, kind: input, shape index: {}]   ;;  %s1502_s4 = inlined_call_operand.hbm [shape: f32[16,256], index: 4, kind: output, shape index: {}]  }
   0x1   :  { %1516 = sst [smem:[#allocation21_spill]] %s1498_s0 }
   0x2   :  { %1517 = sst [smem:[#allocation22_spill]] %s1499_s1 }
   0x3   :  { %1518 = sst [smem:[#allocation23_spill]] %s1501_s3 }
   0x4   :  { %1519 = sst [smem:[#allocation24_spill]] %s1502_s4 }
   0x5   :  { %9 = vsyncpa [#allocation3], 0 }
   0x6   :  { %11 = vsyncpa [#allocation3 + $0x1], 0 }
   0x7   :  { %12 = vsyncpa [#allocation6], 0 }
   0x8   :  { %14 = vsyncpa [#allocation6 + $0x1], 0 }
   0x9   :  { %15 = vsyncpa [#allocation4], 0 }
   0xa   :  { %17 = vsyncpa [#allocation4 + $0x1], 0  ;;  %s1142_s15 = smov 0   ;;  %s1144_s16 = smov 0  }
   0xb   :  { %s1146_s17 = smov 0   ;;  %s1148_s18 = smov 0  }
   0xc   :  { %s1150_s19 = smov 0   ;;  %s1152_s20 = smov 0  }
   0xd   :  { %s1154_s21 = smov 0   ;;  %s1156_s22 = smov 0  }
   0xe   :  { %s1158_s23 = smov 0   ;;  %s1160_s24 = smov 0  }
   0xf   :  { %s1162_s25 = smov 0   ;;  %s1164_s26 = smov 0  }
  0x10   :  { %s1166_s27 = smov 0   ;;  %s1168_s28 = smov 0  }
  0x11 LB: > { %1520 = sst [smem:[#allocation13_spill]] %s1072_s19  ;;  %p1512_p0 = scmp.eq.s32.totalorder %s1108_s28, 0  ;;  %s1108_s28 = sphi %s1168_s28, %s23_s28   ;;  %s1104_s27 = sphi %s1166_s27, %s1563_s27   ;;  %s1100_s26 = sphi %s1164_s26, %s1573_s26   ;;  %s1096_s25 = sphi %s1162_s25, %s1561_s25   ;;  %s1092_s24 = sphi %s1160_s24, %s1572_s24   ;;  %s1088_s23 = sphi %s1158_s23, %s1571_s23   ;;  %s1084_s22 = sphi %s1156_s22, %s1570_s22   ;;  %s1080_s21 = sphi %s1154_s21, %s1560_s21   ;;  %s1076_s20 = sphi %s1152_s20, %s1569_s20   ;;  %s1072_s19 = sphi %s1150_s19, %s1568_s19   ;;  %s1068_s18 = sphi %s1148_s18, %s1559_s18   ;;  %s1064_s17 = sphi %s1146_s17, %s1567_s17   ;;  %s1060_s16 = sphi %s1144_s16, %s1566_s16   ;;  %s1056_s15 = sphi %s1142_s15, %s1565_s15  }
  0x12   : > { %1521 = sst [smem:[#allocation14_spill]] %s1084_s22  ;;  %p75_p1 = scmp.ne.s32.totalorder %s1076_s20, %s1072_s19 }
  0x13   : > { %1522 = sst [smem:[#allocation15_spill]] %s1092_s24  ;;  %p81_p2 = scmp.ne.s32.totalorder %s1072_s19, %s1068_s18 }
  0x14   : > { %1523 = sst [smem:[#allocation16_spill]] %s1096_s25  ;;  %p77_p3 = por %p75_p1, %p1512_p0 }
  0x15   : > { %1524 = sst [smem:[#allocation17_spill]] %s1104_s27  ;;  %p739_p4 = scmp.lt.s32.totalorder %s1108_s28, 4 }
  0x16   : > { %s206_s5 = sand.u32 1, %s1108_s28   ;;  %s208_s6 = sand.u32 1, %s1076_s20  }
  0x17   : > { %s662_s7 = sshll.u32 %s208_s6, 7  ;;  %s663_s8 = sshll.u32 %s1100_s26, 6 }
  0x18   : > { %s1525_s1 = sld [smem:[#allocation22_spill]]  ;;  %s210_s12 = scalar_lea.vmem [#allocation5], %s662_s7 }
  0x19   : > { %s216_s13 = sshll.u32 %s210_s12, 4  ;;  %p1230_p5 = pnand %p739_p4, %p77_p3  ;;  %s217_s13 = int_to_ptr.vmem [resolvable:$true] %s216_s13 }
  0x1a   : > { %s1234_s30 = scalar_lea.sflag [#allocation6], %s206_s5  ;;  %s885_s29 = scalar_lea.vmem %s217_s13, 2048 }
  0x1b   : > { %p874_p6 = pneg %p1230_p5  ;;  %p886_p7 = scmp.ne.s32.totalorder %s217_s13, %s885_s29 }
  0x1c   : > { %s1110_s6 = smov [#allocation5]  }
  0x1d   : > { %p888_p8 = pnand %p886_p7, %p874_p6  ;;  %s890_s9 = sshll.u32 %s1110_s6, 4  ;;  %s891_s9 = int_to_ptr.vmem [resolvable:$false] %s890_s9 }
  0x1e   : > { %s215_s11 = scalar_lea.hbm %s1525_s1, %s663_s8  ;;  %s892_s7 = scalar_lea.vmem %s891_s9, 4096 }
  0x1f   : > { %p889_p9 = pneg %p888_p8  ;;  %p893_p10 = scmp.lt.s32.totalorder %s217_s13, %s891_s9 }
  0x20   : > { %p894_p11 = scmp.lt.s32.totalorder %s892_s7, %s885_s29 }
  0x22   : > { %p895_p12 = por %p894_p11, %p893_p10 }
  0x24   : > { %p896_p13 = pnand %p895_p12, %p889_p9 }
  0x26   : > { %899 = shalt.err (!%p896_p13)
}
  0x27   : > { %s1111_s8 = smov 128   ;;  %s1112_s29 = smov 64  }
  0x28   : > { %s1113_s5 = smov 4   ;;  %p667_p1 = scmp.ge.s32.totalorder %s1108_s28, 1 }
  0x29   : > { %731 = dma.hbm_to_vmem [thread:$0]  (!%p1230_p5), %s215_s11, 2048, %s217_s13, %s1234_s30, %s1111_s8, %s1112_s29, %s1113_s5  }
  0x2a   : > { %p250_p3 = scmp.lt.s32.totalorder %s1108_s28, 5  ;;  %s1248_s12 = sadd.s32 4294967295, %s1108_s28  }
  0x2b   : > { %s1528_s6 = sadd.s32 1, %s1100_s26  ;;  %s35_s14 = sadd.s32 1, %s1104_s27 }
  0x2c   : > { %p1243_p6 = pnand %p667_p1, %p250_p3  ;;  %p33_p7 = scmp.ge.s32.totalorder %s1528_s6, 2 }
  0x2d   : > { %s42_s9 = sadd.s32 1, %s1088_s23  ;;  %p49_p5 = scmp.ne.s32.totalorder %s1088_s23, %s1084_s22 }
  0x2e   : > { %s1529_s11 = smov %s1528_s6  ;;  %s1577_s14 = smov (!%p33_p7, %s35_s14), %s1104_s27 }
  0x2f   : > { %s1575_s11 = smov (%p33_p7, %s1529_s11), 0  ;;  %p1263_p8 = por %p1512_p0, %p49_p5 }
  0x30   : > { %1530 = sst [smem:[#allocation18_spill]] %s1575_s11  ;;  %p55_p9 = scmp.ne.s32.totalorder %s1084_s22, %s1080_s21 }
  0x31   : > { %p37_p10 = scmp.ge.s32.totalorder %s1577_s14, 2  ;;  %p1511_p11 = scmp.eq.s32.totalorder %s1248_s12, 0 }
  0x32   : > { %s65_s7 = ssub.s32 %s1100_s26, %s1575_s11  ;;  %s187_s8 = sand.u32 1, %s1088_s23  }
  0x33   : > { %s1579_s14 = smov (%p37_p10, %s1577_s14), 0  ;;  %p1277_p12 = por %p1511_p11, %p55_p9 }
  0x34   : > { %1532 = sst [smem:[#allocation19_spill]] %s1579_s14  ;;  %p66_p13 = scmp.eq.s32.totalorder %s65_s7, 0 }
  0x35   : > { %s1533_s29 = scalar_select %p1277_p12, 1, 0 }
  0x36   : > { %s39_s5 = ssub.s32 %s1104_s27, %s1579_s14  ;;  %p1288_p1 = por %p81_p2, %p1511_p11 }
  0x37   : > { %1534 = sst [smem:[#allocation20_spill]] %s1533_s29  ;;  %p40_p3 = scmp.eq.s32.totalorder %s39_s5, 0 }
  0x38   : > { %s93_s6 = sor.u32 %s65_s7, %s39_s5  ;;  %s1536_s1 = sadd.s32 1, %s1076_s20 }
  0x39   : > { %s1295_s11 = scalar_select %p66_p13, %s1076_s20, %s1536_s1  }
  0x3a   : > { %s1298_s4 = scalar_select %p40_p3, %s1088_s23, %s42_s9  }
  0x3b   : > { %p1300_p7 = scmp.eq.s32.totalorder %s93_s6, 0  ;;  %s659_s25 = sshll.u32 %s187_s8, 4 }
  0x3c   : > { %s694_s24 = sshll.u32 %s1104_s27, 8  ;;  %s1538_s0 = sld [smem:[#allocation21_spill]] }
  0x3d   : > { %s191_s19 = scalar_lea.vmem [#allocation2], %s659_s25  ;;  %p1312_p2 = pnand %p739_p4, %p1263_p8 }
  0x3e   : > { %s199_s22 = sshll.u32 %s191_s19, 4  ;;  %s188_s1 = scalar_lea.sflag [#allocation3], %s187_s8  ;;  %s200_s22 = int_to_ptr.vmem [resolvable:$true] %s199_s22 }
  0x3f   : > { %p902_p5 = pneg %p1312_p2  ;;  %s913_s9 = scalar_lea.vmem %s200_s22, 256 }
  0x40   : > { %p914_p9 = scmp.ne.s32.totalorder %s200_s22, %s913_s9  ;;  %s1114_s5 = smov [#allocation2]  }
  0x41   : > { %s918_s14 = sshll.u32 %s1114_s5, 4  ;;  %s919_s14 = int_to_ptr.vmem [resolvable:$false] %s918_s14 }
  0x42   : > { %s197_s18 = scalar_lea.hbm %s1538_s0, %s694_s24  ;;  %p916_p10 = pnand %p914_p9, %p902_p5 }
  0x43   : > { %s920_s24 = scalar_lea.vmem %s919_s14, 512  ;;  %p921_p3 = scmp.lt.s32.totalorder %s200_s22, %s919_s14 }
  0x44   : > { %p917_p13 = pneg %p916_p10  ;;  %p922_p11 = scmp.lt.s32.totalorder %s920_s24, %s913_s9 }
  0x46   : > { %p923_p0 = por %p922_p11, %p921_p3 }
  0x48   : > { %p924_p8 = pnand %p923_p0, %p917_p13 }
  0x4a   : > { %927 = shalt.err (!%p924_p8)
}
  0x4b   : > { %728 = dma.hbm_to_vmem [thread:$0]  (!%p1312_p2), %s197_s18, 256, %s200_s22, %s188_s1  }
  0x4c   : > { %s656_s19 = sadd.s32 4294967294, %s1108_s28   ;;  %s96_s25 = sadd.s32 1, %s1064_s17 }
  0x4d   : > { %s1325_s13 = scalar_select %p1300_p7, %s1064_s17, %s96_s25  }
  0x4e   : > { %p103_p0 = scmp.ne.s32.totalorder %s1064_s17, %s1060_s16  ;;  %p109_p11 = scmp.ne.s32.totalorder %s1060_s16, %s1056_s15 }
  0x4f   : > { %p161_p5 = scmp.eq.s32.totalorder %s1248_s12, 3  ;;  %p167_p9 = scmp.eq.s32.totalorder %s656_s19, 3 }
  0x50   : > { %p1540_p10 = scmp.eq.s32.totalorder %s1108_s28, 0  ;;  %p1542_p3 = scmp.eq.s32.totalorder %s1248_s12, 0 }
  0x51   : > { %p1344_p2 = por %p161_p5, %p103_p0  ;;  %p1348_p7 = por %p167_p9, %p109_p11 }
  0x52   : > { %p1334_p13 = por %p103_p0, %p1540_p10  ;;  %p1340_p8 = por %p109_p11, %p1542_p3 }
  0x53   : > { %s1544_s3 = scalar_select %p1344_p2, 1, 0 }
  0x54   : > { %s1543_s29 = scalar_select %p1340_p8, 1, 0 }
  0x55   : > { %s1545_s22 = scalar_select %p1348_p7, 1, 0 }
  0x56   : > { %s228_s6 = sand.u32 1, %s1064_s17   ;;  %s665_s18 = sshll.u32 %s1104_s27, 1 }
  0x57   : > { %s664_s7 = sshll.u32 %s228_s6, 3  ;;  %s235_s1 = sadd.s32 %s1100_s26, %s665_s18 }
  0x58   : > { %s666_s9 = sshll.u32 %s235_s1, 7  ;;  %s230_s19 = scalar_lea.vmem [#allocation7], %s664_s7 }
  0x59   : > { %s237_s24 = scalar_lea.hbm %s1500_s2, %s666_s9  ;;  %s239_s25 = sshll.u32 %s230_s19, 4  ;;  %s240_s25 = int_to_ptr.vmem [resolvable:$true] %s239_s25 }
  0x5a   : > { %p1362_p0 = pnand %p739_p4, %p1334_p13  ;;  %s941_s27 = scalar_lea.vmem %s240_s25, 128 }
  0x5b   : > { %p942_p5 = scmp.ne.s32.totalorder %s240_s25, %s941_s27  ;;  %s1115_s6 = smov [#allocation7]  }
  0x5c   : > { %p930_p11 = pneg %p1362_p0  ;;  %s946_s18 = sshll.u32 %s1115_s6, 4  ;;  %s947_s18 = int_to_ptr.vmem [resolvable:$false] %s946_s18 }
  0x5d   : > { %s948_s1 = scalar_lea.vmem %s947_s18, 256  ;;  %p949_p3 = scmp.lt.s32.totalorder %s240_s25, %s947_s18 }
  0x5e   : > { %p944_p9 = pnand %p942_p5, %p930_p11  ;;  %p950_p7 = scmp.lt.s32.totalorder %s948_s1, %s941_s27 }
  0x60   : > { %p945_p10 = pneg %p944_p9  ;;  %p951_p2 = por %p950_p7, %p949_p3 }
  0x62   : > { %p952_p8 = pnand %p951_p2, %p945_p10 }
  0x64   : > { %955 = shalt.err (!%p952_p8)
}
  0x65   : > { %734 = dma.hbm_to_vmem [thread:$0]  (!%p1362_p0), %s237_s24, 128, %s240_s25, %s1234_s30  }
  0x66   : > { %254 = sbr.rel (%p1243_p6) target bundleno = 373 (0x175), region = 36  ;;  %s1547_s8 = sld [smem:[#allocation14_spill]] (!%p1243_p6) }
  0x6c   : > { %s256_s9 = sand.u32 1, %s1547_s8  }
  0x6d   : > { %s1374_s5 = sshll.u32 %s256_s9, 4  ;;  %s257_s14 = scalar_lea.sflag [#allocation3], %s256_s9 }
  0x6e   : > { %s260_s19 = scalar_lea.vmem [#allocation2], %s1374_s5 }
  0x6f   : > { %1039 = dma.done.wait (%p1277_p12), %s257_s14, 256  }
  0x70   : > { %1041 = vsyncadd (%p1277_p12), %s257_s14, 4294967040  ;;  %s1549_s0 = sld [smem:[#allocation13_spill]]  ;;  %s265_s27 = sand.u32 1, %s1248_s12  }
  0x71   : > { %s266_s24 = scalar_lea.sflag [#allocation6], %s265_s27 }
  0x76   : > { %s267_s30 = sand.u32 1, %s1549_s0  }
  0x77   : > { %s669_s10 = sshll.u32 %s267_s30, 7 }
  0x78   : > { %s1383_s25 = scalar_lea.vmem [#allocation5], %s669_s10 }
  0x79   : > { %1043 = dma.done.wait (%p1288_p1), %s266_s24, 2048  }
  0x7a   : > { %1045 = vsyncadd (%p1288_p1), %s266_s24, 4294965248  ;;  %s276_s6 = sand.u32 1, %s1060_s16   ;;  %p1550_p4 = scmp.ne.s32.totalorder %s1543_s29, 0 }
  0x7b   : > { %s1392_s18 = sshll.u32 %s276_s6, 3 }
  0x7c   : > { %s278_s1 = scalar_lea.vmem [#allocation7], %s1392_s18 }
  0x7d   : > { %1047 = dma.done.wait (%p1550_p4), %s266_s24, 128  }
  0x7e   : > { %1049 = vsyncadd (%p1550_p4), %s266_s24, 4294967168  ;;  %v856_v0 = vld [vmem:[%s1383_s25 + $0x78] sm:$0xff]   ;;  %v858_v2 = vld [vmem:[%s1383_s25 + $0x70] sm:$0xff]   ;;  %s1551_s12 = sld [smem:[#allocation15_spill]]  ;;  %p1556_p1 = scmp.ne.s32.totalorder %s1544_s3, 0 }
  0x7f   : > { %v857_v1 = vld [vmem:[%s1383_s25 + $0x38] sm:$0xff]   ;;  %695 = vmatprep.subr.bf16.mxu0 %v856_v0  ;;  %v859_v3 = vld [vmem:[%s1383_s25 + $0x30] sm:$0xff]   ;;  %v860_v4 = vld [vmem:[%s1383_s25 + $0x68] sm:$0xff]   ;;  %s1552_s21 = sld [smem:[#allocation16_spill]] }
  0x80   : > { %696 = vmatpush3.bf16.msra.mxu0 %v857_v1  ;;  %v861_v5 = vld [vmem:[%s1383_s25 + $0x28] sm:$0xff]   ;;  %v862_v6 = vld [vmem:[%s1383_s25 + $0x60] sm:$0xff]   ;;  %v864_v8 = vld [vmem:[%s1383_s25 + $0x58] sm:$0xff]   ;;  %s1553_s14 = sld [smem:[#allocation23_spill]] }
  0x81   : > { %697 = vmatprep.subr.bf16.mxu0 %v858_v2  ;;  %v863_v7 = vld [vmem:[%s1383_s25 + $0x20] sm:$0xff]   ;;  %v865_v9 = vld [vmem:[%s1383_s25 + $0x18] sm:$0xff]   ;;  %v866_v10 = vld [vmem:[%s1383_s25 + $0x50] sm:$0xff]  }
  0x82   : > { %v321_v11 = vld [vmem:[%s260_s19 + $0x8] sm:$0xff]  ;;  %v867_v13 = vld [vmem:[%s1383_s25 + $0x10] sm:$0xff]   ;;  %v870_v16 = vld [vmem:[%s1383_s25 + $0x40] sm:$0xff]  }
  0x83   : > { %v323_v12 = vpack.c.bf16 %v321_v11, %v321_v11  ;;  %v868_v14 = vld [vmem:[%s1383_s25 + $0x48] sm:$0xff]   ;;  %v871_v17 = vld [vmem:[%s1383_s25] sm:$0xff]  }
  0x84   : > { %698 = vmatpush3.bf16.msra.mxu0 %v859_v3  ;;  %v869_v15 = vld [vmem:[%s1383_s25 + $0x8] sm:$0xff]   ;;  %v320_v18 = vld [vmem:[%s260_s19] sm:$0xff]  ;;  %p316_p6 = scmp.lt.s32.totalorder %s1551_s12, 1  ;;  %s315_s19 = scalar_lea.vmem [#allocation8], %s1392_s18 }
  0x85   : > { %699 = vmatprep.subr.bf16.mxu0 %v860_v4  ;;  %491 = vmatprep.mubr.bf16.mxu0 %v323_v12  ;;  %v322_v19 = vpack.c.bf16 %v320_v18, %v320_v18  ;;  %s690_s8 = sshll.u32 %s1552_s21, 1  ;;  %v499_v24 = vld [vmem:[%s278_s1] sm:$0xff]  ;;  %s518_s30 = sshll.u32 %s315_s19, 4  ;;  %s519_s30 = int_to_ptr.vmem [resolvable:$true] %s518_s30 }
  0x86   : > { %s317_s29 = scalar_select %p316_p6, %s1551_s12, 1 }
  0x87   : > { %s514_s27 = sadd.s32 %s1551_s12, %s690_s8  ;;  %s1554_s25 = sld [smem:[#allocation24_spill]] }
  0x88   : > { %700 = vmatpush3.bf16.msra.mxu0 %v861_v5  ;;  %s318_s0 = scalar_lea.vmem %s1553_s14, %s317_s29  ;;  %s691_s5 = sshll.u32 %s514_s27, 7 }
  0x89   : > { %701 = vmatprep.subr.bf16.mxu0 %v862_v6  ;;  %v672_v21 = vld [vmem:[%s318_s0] ss:$0 sm:$0xff]  ;;  %s503_s12 = scalar_lea.sflag [#allocation4], %s276_s6  ;;  %s956_s29 = scalar_lea.vmem %s519_s30, 128 }
  0x8a   : > { %p957_p12 = scmp.ne.s32.totalorder %s519_s30, %s956_s29  ;;  %s1116_s1 = smov [#allocation8]  }
  0x8b   : > { %s960_s8 = sshll.u32 %s1116_s1, 4  ;;  %s961_s8 = int_to_ptr.vmem [resolvable:$false] %s960_s8 }
  0x8c   : > { %702 = vmatpush3.bf16.msra.mxu0 %v863_v7  ;;  %p958_p13 = pnand %p957_p12, %p1556_p1  ;;  %s962_s18 = scalar_lea.vmem %s961_s8, 256 }
  0x8d   : > { %703 = vmatprep.subr.bf16.mxu0 %v864_v8  ;;  %s1555_s7 = smov %s1554_s25  ;;  %s516_s21 = scalar_lea.hbm %s1554_s25, %s691_s5 }
  0x8e   : > { %p959_p8 = pneg %p958_p13  ;;  %p963_p2 = scmp.lt.s32.totalorder %s519_s30, %s961_s8 }
  0x8f   : > { %p964_p7 = scmp.lt.s32.totalorder %s962_s18, %s956_s29 }
  0x90   : > { %704 = vmatpush3.bf16.msra.mxu0 %v865_v9 }
  0x91   : > { %705 = vmatprep.subr.bf16.mxu0 %v866_v10  ;;  %p965_p0 = por %p964_p7, %p963_p2 }
  0x93   : > { %p966_p11 = pnand %p965_p0, %p959_p8 }
  0x94   : > { %706 = vmatpush3.bf16.msra.mxu0 %v867_v13 }
  0x95   : > { %707 = vmatprep.subr.bf16.mxu0 %v868_v14 }
  0x98   : > { %708 = vmatpush3.bf16.msra.mxu0 %v869_v15 }
  0x99   : > { %709 = vmatprep.subr.bf16.mxu0 %v870_v16 }
  0x9c   : > { %710 = vmatpush3.bf16.msra.mxu0 %v871_v17 }
  0x9f   : > { %492 = vmatmul.mubr.bf16.vlgmr.msra.gmra.mxu0 %v322_v19 }
 0x15f   : > { %v711_v20 = vpop.f32.mrf.mxu0 }
 0x161   : > { %v712_v22 = vpop.f32.mrf.mxu0 }
 0x162   : > { %v713_v23 = vadd.f32 %v712_v22, %v711_v20 }
 0x163   : > { %v714_v25 = vpop.f32.mrf.mxu0 }
 0x164   : > { %v494_v26 = vadd.f32 %v713_v23, %v672_v21 }
 0x165   : > { %v715_v27 = vpop.f32.mrf.mxu0 }
 0x166   : > { %v500_v28 = vadd.f32 %v499_v24, %v494_v26 }
 0x168   : > { %501 = vst [vmem:[%s315_s19] sm:$0xff] %v500_v28 }
 0x169   : > { %969 = shalt.err (!%p966_p11)
}
 0x16a   : > { %s970_s9 = scalar_lea.hbm %s516_s21, 128  ;;  %s974_s0 = scalar_lea.hbm %s1555_s7, 512 }
 0x16b   : > { %p971_p5 = scmp.ne.s32.totalorder %s516_s21, %s970_s9  ;;  %p975_p3 = scmp.lt.s32.totalorder %s516_s21, %s1555_s7 }
 0x16c   : > { %p976_p4 = scmp.lt.s32.totalorder %s974_s0, %s970_s9 }
 0x16d   : > { %p972_p9 = pnand %p971_p5, %p1556_p1 }
 0x16e   : > { %p977_p6 = por %p976_p4, %p975_p3 }
 0x16f   : > { %p973_p10 = pneg %p972_p9 }
 0x171   : > { %p978_p12 = pnand %p977_p6, %p973_p10 }
 0x173   : > { %981 = shalt.err (!%p978_p12)
}
 0x174   : > { %723 = dma.vmem_to_hbm [thread:$0]  (%p1556_p1), %s519_s30, 128, %s516_s21, %s503_s12  }
 0x175 PF: > { %p740_p13 = scmp.ge.s32.totalorder %s1108_s28, 2  ;;  %s530_s19 = sand.u32 1, %s1056_s15  }
 0x176   : > { %p1557_p8 = scmp.ne.s32.totalorder %s1545_s22, 0  ;;  %s531_s10 = scalar_lea.sflag [#allocation4], %s530_s19 }
 0x178   : > { %p736_p2 = pnand %p740_p13, %p1557_p8 }
 0x17a   : > { %p737_p7 = pneg %p736_p2 }
 0x17c   : > { %1051 = dma.done.wait (%p737_p7), %s531_s10, 128  }
 0x17d   : > { %1053 = vsyncadd (%p737_p7), %s531_s10, 4294967168  ;;  %s23_s28 = sadd.s32 1, %s1108_s28   ;;  %s1559_s18 = sld [smem:[#allocation13_spill]] }
 0x17e   : > { %p1451_p0 = scmp.ge.s32.totalorder %s23_s28, 6   ;;  %s1560_s21 = sld [smem:[#allocation14_spill]] }
 0x17f   : > { %s1561_s25 = sld [smem:[#allocation17_spill]]  ;;  %s1565_s15 = smov %s1060_s16 }
 0x180   : > { %s1562_s3 = sld [smem:[#allocation18_spill]]  ;;  %s1566_s16 = smov %s1064_s17 }
 0x181   : > { %s1563_s27 = sld [smem:[#allocation19_spill]]  ;;  %s1567_s17 = smov %s1325_s13 }
 0x182   : > { %s1568_s19 = smov %s1076_s20  ;;  %s1569_s20 = smov %s1295_s11 }
 0x183   : > { %s1570_s22 = smov %s1088_s23  ;;  %s1571_s23 = smov %s1298_s4 }
 0x184   : > { %s1572_s24 = smov %s1100_s26  ;;  %22 = sbr.rel (!%p1451_p0) target bundleno = 17 (0x11), region = 108 }
 0x186   : > { %s1573_s26 = smov %s1562_s3 }
 0x189   :  { %536 = vsyncpa [#allocation3], 1 }
 0x18a   :  { %538 = vsyncpa [#allocation3 + $0x1], 1 }
 0x18b   :  { %539 = vsyncpa [#allocation6], 1 }
 0x18c   :  { %541 = vsyncpa [#allocation6 + $0x1], 1 }
 0x18d   :  { %542 = vsyncpa [#allocation4], 1 }
 0x18e   :  { %544 = vsyncpa [#allocation4 + $0x1], 1 }

</bundles_post_ra>
